<compile_context>
chip_gen: v6e
topology: v6e:2x2x1
jax: 0.10.0
libtpu: 0.0.40
codegen_flags: <defaults>
</compile_context>

<pallas_src>
import functools

import jax
import jax.numpy as jnp
from jax import lax
from jax.experimental import pallas as pl
from jax.experimental.pallas import tpu as pltpu

_LOGITS_BLOCK_BYTES = 4 * 1024 * 1024   # native-dtype bytes per streamed logits buffer
_SUBCHUNK_F32_BYTES = 128 * 1024        # f32 working-set target for the in-kernel row loop
_MIN_GRID_STEPS = 4                     # keep DMA/compute pipelined + both v7x TCs busy


def _round_up8(v: int) -> int:
    return ((v + 7) // 8) * 8


def _choose_sub_rows(n: int, c: int) -> int:
    """Rows per in-kernel sub-chunk: keeps f32 temporaries small, multiple of 8."""
    rows = _SUBCHUNK_F32_BYTES // max(1, c * 4)
    rows = max(8, min(256, (rows // 8) * 8))
    return min(rows, max(8, _round_up8(n)))


def _choose_tile_n(n: int, c: int, itemsize: int, sub_rows: int) -> int:
    """Rows per streamed logits block (multiple of sub_rows)."""
    rows = _LOGITS_BLOCK_BYTES // max(1, c * itemsize)
    rows = max(sub_rows, (rows // sub_rows) * sub_rows)
    # Never collapse a big batch into < _MIN_GRID_STEPS grid steps: that kills
    # DMA/compute overlap and leaves one v7x TensorCore idle.
    if n > _MIN_GRID_STEPS * sub_rows:
        cap = max(sub_rows, ((n // _MIN_GRID_STEPS) // sub_rows) * sub_rows)
        rows = min(rows, cap)
    # ...but don't blow a tiny batch up into a giant mostly-padded tile either.
    n_up = ((n + sub_rows - 1) // sub_rows) * sub_rows
    return min(rows, n_up)


def _soft_ce_kernel(x_ref, t_ref, o_ref, *, n_valid, tile_n, sub_rows, exp_dtype):
    """One grid step: partial loss sum over a (tile_n, C) block of logits.

    x_ref : (tile_n, C) logits in native dtype (bf16/f32)
    t_ref : (tile_n, 1) int32 class indices (streamed alongside the logits)
    o_ref : (1, 1, 1)   f32 partial loss sum for this tile
    """
    row0 = pl.program_id(0) * tile_n
    n_sub = tile_n // sub_rows
    mask_rows = (n_valid % tile_n) != 0          # only a ragged last tile needs masking

    def body(s, acc):
        start = pl.multiple_of(s * sub_rows, sub_rows)              # sub_rows % 8 == 0
        x = x_ref[pl.ds(start, sub_rows), :].astype(jnp.float32)    # (sub_rows, C)
        t = t_ref[pl.ds(start, sub_rows), :]                        # (sub_rows, 1)

        # Fused single pass over the loaded sub-chunk: row max and the target
        # logit via lane-iota == label (no gather, no (rows, C) log-prob temp).
        m = jnp.max(x, axis=-1, keepdims=True)                      # (sub_rows, 1)
        cls = lax.broadcasted_iota(jnp.int32, x.shape, 1)
        picked = jnp.sum(jnp.where(cls == t, x, 0.0), axis=-1, keepdims=True)

        # exp in bf16 when the inputs are bf16 (doubles EUP throughput on
        # v6e/v7x); the sum explicitly accumulates in f32.
        e = jnp.exp((x - m).astype(exp_dtype))
        lse = m + jnp.log(jnp.sum(e, axis=-1, keepdims=True, dtype=jnp.float32))

        loss = lse - picked                        # = -log_softmax(x)[target]

        if mask_rows:
            # Selection (NOT multiplication) so NaN/Inf from Pallas-padded garbage
            # rows in the ragged last tile cannot leak into the sum.
            ridx = row0 + start + lax.broadcasted_iota(jnp.int32, loss.shape, 0)
            loss = jnp.where(ridx < n_valid, loss, 0.0)

        return acc + jnp.sum(loss, keepdims=True)                    # (1, 1)

    total = lax.fori_loop(0, n_sub, body, jnp.zeros((1, 1), jnp.float32),
                          unroll=min(n_sub, 8))
    o_ref[...] = total.reshape(o_ref.shape)


def soft_target_cross_entropy(x: jax.Array, target: jax.Array, *, tile_n=None) -> jax.Array:
    """x: (N, C) float logits (native dtype); target: (N,) int labels. Scalar mean loss."""
    n, c = x.shape
    itemsize = jnp.dtype(x.dtype).itemsize
    sub_rows = _choose_sub_rows(n, c)

    if tile_n is None:
        tile_n = _choose_tile_n(n, c, itemsize, sub_rows)
    else:
        tile_n = max(8, (int(tile_n) // 8) * 8)
        if tile_n <= sub_rows:
            sub_rows = tile_n
        else:
            tile_n = (tile_n // sub_rows) * sub_rows
    assert tile_n % sub_rows == 0 and sub_rows % 8 == 0

    num_tiles = (n + tile_n - 1) // tile_n
    n_pad = num_tiles * tile_n

    t2d = target.astype(jnp.int32).reshape(n, 1)
    if n_pad != n:
        t2d = jnp.pad(t2d, ((0, n_pad - n), (0, 0)))

    exp_dtype = jnp.bfloat16 if x.dtype == jnp.bfloat16 else jnp.float32
    kernel = functools.partial(
        _soft_ce_kernel, n_valid=n, tile_n=tile_n, sub_rows=sub_rows, exp_dtype=exp_dtype)

    partial_sums = pl.pallas_call(
        kernel,
        out_shape=jax.ShapeDtypeStruct((num_tiles, 1, 1), jnp.float32),
        grid_spec=pltpu.PrefetchScalarGridSpec(
            num_scalar_prefetch=0,
            grid=(num_tiles,),
            in_specs=[
                pl.BlockSpec((tile_n, c), lambda i: (i, 0)),   # big streamed logits block
                pl.BlockSpec((tile_n, 1), lambda i: (i, 0)),   # streamed int32 targets
            ],
            out_specs=pl.BlockSpec((1, 1, 1), lambda i: (i, 0, 0)),  # per-tile partial sum
        ),
        compiler_params=pltpu.CompilerParams(
            # Independent per-tile partial sums -> grid axis shards across
            # TensorCores (v7x megacore); harmless on 1-TC v5e/v6e.
            dimension_semantics=("parallel",),
            # ~2x4 MiB double-buffered logits blocks + sub-chunk temporaries fit
            # comfortably; 48 MiB stays under v7x's 64 MiB physical VMEM.
            vmem_limit_bytes=48 * 1024 * 1024,
        ),
    )(x, t2d)

    # Tiny final tree-reduction + mean in plain JAX.
    return jnp.sum(partial_sums) / jnp.float32(n)


def _reference(x, target):
    logp = jax.nn.log_softmax(x.astype(jnp.float32), axis=-1)
    onehot = jax.nn.one_hot(target, x.shape[-1], dtype=jnp.float32)
    return jnp.mean(jnp.sum(-onehot * logp, axis=-1))


if __name__ == "__main__":
    keys = jax.random.split(jax.random.PRNGKey(0), 8)

    # Case 1: small batch, single tile, default sizing.
    x1 = jax.random.normal(keys[0], (16, 32), dtype=jnp.float32)
    t1 = jax.random.randint(keys[1], (16,), 0, 32, dtype=jnp.int32)
    l1 = jax.block_until_ready(soft_target_cross_entropy(x1, t1))
    r1 = _reference(x1, t1)
    assert jnp.allclose(l1, r1, atol=1e-4, rtol=1e-4), (l1, r1)

    # Case 2: ragged batch + explicit small tile -> multi-step grid + row masking.
    x2 = jax.random.normal(keys[2], (20, 32), dtype=jnp.float32)
    t2 = jax.random.randint(keys[3], (20,), 0, 32, dtype=jnp.int32)
    l2 = jax.block_until_ready(soft_target_cross_entropy(x2, t2, tile_n=8))
    r2 = _reference(x2, t2)
    assert jnp.allclose(l2, r2, atol=1e-4, rtol=1e-4), (l2, r2)

    # Case 3: wider class dim -> exercises the in-kernel sub-chunk fori_loop (>1 iter).
    x3 = jax.random.normal(keys[4], (64, 2048), dtype=jnp.float32)
    t3 = jax.random.randint(keys[5], (64,), 0, 2048, dtype=jnp.int32)
    l3 = jax.block_until_ready(soft_target_cross_entropy(x3, t3))
    r3 = _reference(x3, t3)
    assert jnp.allclose(l3, r3, atol=1e-4, rtol=1e-4), (l3, r3)

    # Case 4: bf16 logits -> bf16 exp path with f32 accumulation.
    x4 = jax.random.normal(keys[6], (48, 96), dtype=jnp.float32).astype(jnp.bfloat16)
    t4 = jax.random.randint(keys[7], (48,), 0, 96, dtype=jnp.int32)
    l4 = jax.block_until_ready(soft_target_cross_entropy(x4, t4))
    r4 = _reference(x4, t4)
    assert jnp.allclose(l4, r4, atol=2e-2, rtol=2e-2), (l4, r4)

    print("KERNEL_OK")
</pallas_src>

<mosaic_0001>
module attributes {stable_mosaic.version = 11 : i64} {
  func.func @_soft_ce_kernel(%arg0: i32, %arg1: memref<16x32xf32, #tpu.memory_space<vmem>>, %arg2: memref<16x1xi32, #tpu.memory_space<vmem>>, %arg3: memref<1x1x1xf32, #tpu.memory_space<vmem>>) attributes {dimension_semantics = [#tpu.dimension_semantics<parallel>], iteration_bounds = array<i64: 1>, scalar_prefetch = 0 : i64, scratch_operands = 0 : i64, tpu.core_type = #tpu.core_type<tc>, window_params = [{transform_indices = @transform_0, window_bounds = array<i64: 16, 32>}, {transform_indices = @transform_1, window_bounds = array<i64: 16, 1>}, {transform_indices = @transform_2, window_bounds = array<i64: 1, 1, 1>}]} {
    %cst = arith.constant 0.000000e+00 : f32
    %0 = vector.broadcast %cst : f32 to vector<1x1xf32>
    %c0_i32 = arith.constant 0 : i32
    %c16_i32 = arith.constant 16 : i32
    %1 = arith.muli %c0_i32, %c16_i32 : i32
    %2 = tpu.assume_multiple %1, 16 : i32
    %3 = arith.index_cast %2 : i32 to index
    %c0 = arith.constant 0 : index
    %4 = vector.load %arg1[%3, %c0] : memref<16x32xf32, #tpu.memory_space<vmem>>, vector<16x32xf32>
    %5 = arith.index_cast %2 : i32 to index
    %c0_0 = arith.constant 0 : index
    %6 = vector.load %arg2[%5, %c0_0] : memref<16x1xi32, #tpu.memory_space<vmem>>, vector<16x1xi32>
    %cst_1 = arith.constant dense<0xFF800000> : vector<16xf32>
    %7 = vector.multi_reduction <maximumf>, %4, %cst_1 [1] : vector<16x32xf32> to vector<16xf32>
    %8 = vector.shape_cast %7 : vector<16xf32> to vector<16x1xf32>
    %9 = tpu.iota {dimensions = array<i32: 1>} : vector<16x32xi32>
    %10 = vector.broadcast %6 : vector<16x1xi32> to vector<16x32xi32>
    %11 = arith.cmpi eq, %9, %10 : vector<16x32xi32>
    %cst_2 = arith.constant 0.000000e+00 : f32
    %12 = vector.broadcast %cst_2 : f32 to vector<16x32xf32>
    %13 = arith.select %11, %4, %12 : vector<16x32xi1>, vector<16x32xf32>
    %cst_3 = arith.constant dense<0.000000e+00> : vector<16xf32>
    %14 = vector.multi_reduction <add>, %13, %cst_3 [1] : vector<16x32xf32> to vector<16xf32>
    %15 = vector.shape_cast %14 : vector<16xf32> to vector<16x1xf32>
    %16 = vector.broadcast %8 : vector<16x1xf32> to vector<16x32xf32>
    %17 = arith.subf %4, %16 : vector<16x32xf32>
    %18 = math.exp %17 : vector<16x32xf32>
    %cst_4 = arith.constant dense<0.000000e+00> : vector<16xf32>
    %19 = vector.multi_reduction <add>, %18, %cst_4 [1] : vector<16x32xf32> to vector<16xf32>
    %20 = vector.shape_cast %19 : vector<16xf32> to vector<16x1xf32>
    %21 = math.log %20 : vector<16x1xf32>
    %22 = arith.addf %8, %21 : vector<16x1xf32>
    %23 = arith.subf %22, %15 : vector<16x1xf32>
    %24 = vector.shape_cast %23 : vector<16x1xf32> to vector<1x16x1xf32>
    %cst_5 = arith.constant dense<0.000000e+00> : vector<1xf32>
    %25 = vector.multi_reduction <add>, %24, %cst_5 [1, 2] : vector<1x16x1xf32> to vector<1xf32>
    %26 = vector.shape_cast %25 : vector<1xf32> to vector<1x1x1xf32>
    %27 = vector.extract %26[0, 0, 0] : f32 from vector<1x1x1xf32>
    %28 = vector.broadcast %27 : f32 to vector<1x1xf32>
    %29 = arith.addf %0, %28 : vector<1x1xf32>
    %c1_i32 = arith.constant 1 : i32
    %30 = vector.shape_cast %29 : vector<1x1xf32> to vector<1x1x1xf32>
    %c0_6 = arith.constant 0 : index
    %c0_7 = arith.constant 0 : index
    %c0_8 = arith.constant 0 : index
    %31 = vector.load %arg3[%c0_6, %c0_7, %c0_8] : memref<1x1x1xf32, #tpu.memory_space<vmem>>, vector<1x1x1xf32>
    tpu.vector_store %arg3[%c0_6, %c0_7, %c0_8], %30 {strides = array<i32>} : memref<1x1x1xf32, #tpu.memory_space<vmem>>, vector<1x1x1xf32>,
    return
  }
  func.func @transform_0(%arg0: i32) -> (i32, i32) {
    %c0_i32 = arith.constant 0 : i32
    %c0_i32_0 = arith.constant 0 : i32
    return %arg0, %c0_i32 : i32, i32
  }
  func.func @transform_1(%arg0: i32) -> (i32, i32) {
    %c0_i32 = arith.constant 0 : i32
    %c0_i32_0 = arith.constant 0 : i32
    return %arg0, %c0_i32 : i32, i32
  }
  func.func @transform_2(%arg0: i32) -> (i32, i32, i32) {
    %c0_i32 = arith.constant 0 : i32
    %c0_i32_0 = arith.constant 0 : i32
    %c0_i32_1 = arith.constant 0 : i32
    return %arg0, %c0_i32, %c0_i32_0 : i32, i32, i32
  }
}

</mosaic_0001>

<bundles_post_ra>
// kernel: tpu_custom_call.1
= control target key start
LH: loop header
LB: loop body
LE: loop exit
PB: predicated region body
PF: predicated region fallthrough
CT: control target
= control target key end

     0   :  { %vm16_vm0 = vcmask 261120   ;;  %v128_v4 = vmov 0   ;;  %s166_s0 = inlined_call_operand.vmem [shape: f32[16,32], index: 0, kind: input, shape index: {}]   ;;  %s167_s1 = inlined_call_operand.vmem [shape: s32[16,1], index: 1, kind: input, shape index: {}]   ;;  %s168_s2 = inlined_call_operand.hbm [shape: f32[1,1,1], index: 2, kind: output, shape index: {}]  }
   0x1   :  { %v12_v0 = vld [vmem:[%s166_s0] sm:$0xff]  ;;  %v13_v1 = vld [vmem:[%s166_s0 + $0x8] sm:$0xff]  ;;  %96 = vset.pattern.permute.xlu1 %v128_v4  ;;  %97 = vset.pattern.permute.xlu0 %v128_v4 }
   0x2   :  { %v14_v2 = vld [vmem:[%s167_s1] sm:$0xff]  ;;  %v17_v3 = vsel %vm16_vm0, %v12_v0, -inf }
   0x3   :  { %7 = vsyncpa [#allocation3], 0  ;;  %18 = vmax.xlane.f32.xlu0 %v17_v3  ;;  %26 = vperm.xlu1 %96, %v14_v2   ;;  %v20_v5 = vsel %vm16_vm0, %v13_v1, -inf  ;;  %v15_v6 = vld [vmem:[%s167_s1 + $0x8] sm:$0xff]  ;;  %v23_v13 = vlaneseq  ;;  %vm61_vm3 = vcmask 7168   ;;  %s129_s0 = smov [#allocation2]  }
   0x4   :  { %s84_s1 = sshll.u32 %s129_s0, 4  ;;  %vm76_vm4 = vcmask 0   ;;  %s85_s1 = int_to_ptr.vmem [resolvable:$true] %s84_s1 }
   0x5   :  { %v24_v15 = vand.u32 127, %v23_v13  ;;  %s106_s18 = scalar_lea.vmem %s85_s1, 16  ;;  %s110_s19 = scalar_lea.vmem %s85_s1, 32 }
   0x6   :  { %p107_p0 = scmp.ne.s32.totalorder %s85_s1, %s106_s18  ;;  %p111_p1 = scmp.lt.s32.totalorder %s85_s1, %s85_s1 }
   0x7   :  { %21 = vmax.xlane.f32.xlu0 %v20_v5  ;;  %29 = vperm.xlu1 %96, %v15_v6   ;;  %p112_p2 = scmp.lt.s32.totalorder %s110_s19, %s106_s18 }
   0x9   :  { %p113_p3 = por %p112_p2, %p111_p1 }
   0xb   :  { %p114_p4 = pnand %p113_p3, %p107_p0 }
  0x7e   :  { %v27_v14 = vpop.permute.xlu1 %26 }
  0x7f   :  { %vm31_vm1 = vcmp.eq.s32.totalorder %v24_v15, %v27_v14 }
  0x80   :  { %v33_v18 = vsel %vm31_vm1, %v12_v0, 0.0 }
  0x81   :  { %v35_v20 = vsel %vm16_vm0, %v33_v18, 0.0 }
  0x82   :  { %v30_v16 = vpop.permute.xlu1 %29 }
  0x83   :  { %vm32_vm2 = vcmp.eq.s32.totalorder %v24_v15, %v30_v16 }
  0x84   :  { %v34_v22 = vsel %vm32_vm2, %v13_v1, 0.0 }
  0x85   :  { %v38_v24 = vsel %vm16_vm0, %v34_v22, 0.0 }
  0x8c   :  { %v19_v7 = vpop.xlane.xlu0 %18 }
  0x8d   :  { %v41_v8 = vsub.f32 %v12_v0, %v19_v7 }
  0x8f   :  { %v43_v9 = vmul.f32 1.442695, %v41_v8 }
  0x90   :  { %v22_v10 = vpop.xlane.xlu0 %21 }
  0x91   :  { %98 = vpow2.f32 %v43_v9  ;;  %v42_v11 = vsub.f32 %v13_v1, %v22_v10 }
  0x93   :  { %v45_v12 = vmul.f32 1.442695, %v42_v11 }
  0x95   :  { %100 = vpow2.f32 %v45_v12 }
  0x9e   :  { %v99_v17 = vpop.eup %98 }
  0x9f   :  { %v47_v19 = vsel %vm16_vm0, %v99_v17, 0.0 }
  0xa0   :  { %48 = vadd.xlane.f32.xlu0 %v47_v19 }
  0xa2   :  { %v101_v21 = vpop.eup %100 }
  0xa3   :  { %v50_v23 = vsel %vm16_vm0, %v101_v21, 0.0 }
  0xa4   :  { %51 = vadd.xlane.f32.xlu1 %v50_v23  ;;  %36 = vadd.xlane.f32.xlu0 %v35_v20 }
  0xa8   :  { %39 = vadd.xlane.f32.xlu0 %v38_v24 }
 0x129   :  { %v49_v25 = vpop.xlane.xlu0 %48 }
 0x12a   :  { %102 = vlog2.f32 %v49_v25 }
 0x12d   :  { %v52_v26 = vpop.xlane.xlu1 %51  ;;  %v37_v29 = vpop.xlane.xlu0 %36 }
 0x12e   :  { %104 = vlog2.f32 %v52_v26 }
 0x131   :  { %v40_v35 = vpop.xlane.xlu0 %39 }
 0x137   :  { %v103_v27 = vpop.eup %102 }
 0x138   :  { %v54_v28 = vmul.f32 0.6931472, %v103_v27 }
 0x13a   :  { %v57_v30 = vadd.f32 %v54_v28, %v19_v7 }
 0x13b   :  { %v105_v31 = vpop.eup %104 }
 0x13c   :  { %v56_v32 = vmul.f32 0.6931472, %v105_v31  ;;  %v59_v33 = vsub.f32 %v57_v30, %v37_v29 }
 0x13e   :  { %v58_v34 = vadd.f32 %v56_v32, %v22_v10  ;;  %v62_v37 = vsel %vm61_vm3, %v59_v33, 0.0 }
 0x140   :  { %v60_v36 = vsub.f32 %v58_v34, %v40_v35 }
 0x142   :  { %v63_v38 = vsel %vm61_vm3, %v60_v36, 0.0 }
 0x143   :  { %v64_v39 = vadd.f32 %v63_v38, %v62_v37 }
 0x145   :  { %65 = vadd.xlane.f32.xlu0 %v64_v39 }
 0x1ce   :  { %v66_v40 = vpop.xlane.xlu0 %65 }
 0x1cf   :  { %v67_v41 = vrot.slane %v66_v40, 4 }
 0x1d1   :  { %v68_v42 = vadd.f32 %v67_v41, %v66_v40 }
 0x1d3   :  { %v69_v43 = vrot.slane %v68_v42, 2 }
 0x1d5   :  { %v70_v44 = vadd.f32 %v69_v43, %v68_v42 }
 0x1d7   :  { %v71_v45 = vrot.slane %v70_v44, 1 }
 0x1d9   :  { %v72_v46 = vadd.f32 %v71_v45, %v70_v44 }
 0x1db   :  { %92 = vpush %v72_v46 }
 0x20c   :  { %s93_s17 = spop %92 }
 0x20d   :  { %v74_v47 = vstv %s93_s17 }
 0x20e   :  { %77 = vst.msk [vmem:[#allocation2] sm:$0x1] %vm76_vm4, %v74_v47 }
 0x20f   :  { %117 = shalt.err (!%p114_p4)
}
 0x210   :  { %87 = dma.vmem_to_hbm [thread:$0]  %s85_s1, 16, %s168_s2, [#allocation3]  }
 0x211   :  { %126 = dma.done.wait [#allocation3], 16  }
 0x212   :  { %127 = vsyncadd [#allocation3], 4294967280 }
 0x213   :  { %91 = vsyncpa [#allocation3], 1 }

</bundles_post_ra>
